<compile_context>
chip_gen: v5e
topology: v5e:2x2
jax: 0.10.0
libtpu: 0.0.40
codegen_flags: <defaults>
</compile_context>

<pallas_src>
import functools

import jax
import jax.numpy as jnp
from jax.experimental import pallas as pl
from jax.experimental.pallas import tpu as pltpu


# ---------------------------------------------------------------------------
# Pallas kernel
# ---------------------------------------------------------------------------
def gnn_gate_kernel(x_ref, mask_ref, p_ref, out_ref, *, heads, num_experts):
    """GATConv (all heads vectorized) + LayerNorm + feature-mean, all in VMEM.

    x_ref    : [N, D]   node features
    mask_ref : [N, N]   additive adjacency mask: 0 if edge j -> i (or self loop),
                        -1e30 otherwise
    p_ref    : [R, LW]  packed constant parameters:
                          rows [0, D)         GAT linear weight        [D, F]
                          rows [D, D+F)       attention matrix         [F, 2H]
                                              (cols = [a_src | a_dst])
                          rows [D+F, D+F+3+H) bias / gamma / beta /
                                              per-head column one-hots [3+H, F]
    out_ref  : [N, 1]   mean over the F post-LayerNorm features
    """
    H, O = heads, num_experts
    F = H * O
    N, D = x_ref.shape

    w = p_ref[0:D, 0:F]                                                  # [D, F]
    att = p_ref[D:D + F, 0:2 * H]                                        # [F, 2H]
    prm = p_ref[D + F:D + F + 3 + H, 0:F]                                # [3+H, F]
    bias, gamma, beta = prm[0:1, :], prm[1:2, :], prm[2:3, :]

    # NOTE: f32 everywhere at this size. For a scaled-up variant feed the MXU
    # bf16 operands (x, w, attn) with preferred_element_type=f32 on v6e/v7x, but
    # keep softmax / LayerNorm elementwise math in f32 (v5e has no bf16 VPU;
    # v7x MXU has no integer path, so plan on bf16/fp8, not int8).
    xp = jnp.dot(x_ref[...], w, preferred_element_type=jnp.float32)      # [N, F]

    # Both per-head attention projections in one matmul: alpha = [a_src | a_dst].
    alpha = jnp.dot(xp, att, preferred_element_type=jnp.float32)         # [N, 2H]
    a_src_t = alpha[:, :H].T                                             # [H, N] (one hoisted transpose)
    mask = mask_ref[...]                                                 # [N, N]

    # Stack every head's logits on the sublane axis so the softmax and the
    # aggregation matmul run once:
    #   e[(h*N)+i, j] = LeakyReLU(a_dst[i,h] + a_src[j,h]) + mask[i, j]
    # TODO(synk): for large N build this directly into a VMEM scratch (or make
    # heads a grid axis) instead of the per-head slice + concatenate.
    blocks = []
    for h in range(H):
        eh = alpha[:, H + h:H + h + 1] + a_src_t[h:h + 1, :]             # [N, N]
        eh = jnp.where(eh > 0, eh, 0.2 * eh)                             # LeakyReLU(0.2)
        blocks.append(eh + mask)                                         # additive mask, no adj replica
    e = jnp.concatenate(blocks, axis=0)                                  # [H*N, N]

    # One fused softmax over source nodes for all heads.
    e = e - jnp.max(e, axis=-1, keepdims=True)
    p = jnp.exp(e)                                                       # masked entries underflow to 0
    s = jnp.sum(p, axis=-1, keepdims=True)                               # [H*N, 1]
    s = jnp.maximum(s, jnp.float32(1e-30))                               # guard if self-loops ever removed
    inv = pl.reciprocal(s, approx=True)                                  # EUP slot
    inv = inv * (2.0 - s * inv)                                          # one Newton step -> ~f32 exact
    attn = p * inv                                                       # [H*N, N]

    # Single MXU push for every head: [H*N, N] @ [N, F] -> [H*N, F].
    out_all = jnp.dot(attn, xp, preferred_element_type=jnp.float32)

    # Head h keeps only its own num_experts columns (one-hot masks, cheap VPU).
    out_cat = bias
    for h in range(H):
        out_cat = out_cat + out_all[h * N:(h + 1) * N, :] * prm[3 + h:4 + h, :]

    # LayerNorm over the F features (eps = 1e-5) + fused mean over features.
    mu = jnp.mean(out_cat, axis=-1, keepdims=True)
    var = jnp.mean(jnp.square(out_cat - mu), axis=-1, keepdims=True)
    y = (out_cat - mu) * jax.lax.rsqrt(var + jnp.float32(1e-5))
    y = y * gamma + beta
    out_ref[...] = jnp.mean(y, axis=-1, keepdims=True)                   # [N, 1]


# ---------------------------------------------------------------------------
# Constant parameter packing (call ONCE per parameter set, reuse across calls)
# ---------------------------------------------------------------------------
def pack_gnn_gate_params(params, *, heads, num_experts):
    """Pack all constant GATConv / LayerNorm parameters into one VMEM slab.

    Doing this once removes ~6 small XLA packing ops per gnn_gate call and
    collapses 4 parameter DMAs into a single one.
    """
    H, O = heads, num_experts
    F = H * O
    D = params["w"].shape[0]
    assert D % 8 == 0 and F % 8 == 0, "pad D / F to multiples of 8 (sublane alignment)"

    # Column -> head one-hot matrix [F, H].
    seg = (jnp.arange(F)[:, None] // O == jnp.arange(H)[None, :]).astype(jnp.float32)
    # One [F, 2H] attention matrix (xp @ att yields [a_src | a_dst] per head).
    att = jnp.concatenate([params["att_src"].reshape(F, 1) * seg,
                           params["att_dst"].reshape(F, 1) * seg], axis=1)
    # bias / gamma / beta / segT rows -> [3+H, F].
    prm = jnp.concatenate(
        [params["bias"], params["gamma"], params["beta"], seg.T], axis=0)

    lw = max(F, 2 * H)
    pad = lambda a: jnp.pad(a, ((0, 0), (0, lw - a.shape[1])))
    slab = jnp.concatenate([pad(params["w"]), pad(att), pad(prm)], axis=0)
    rows = slab.shape[0]
    slab = jnp.pad(slab, ((0, (-rows) % 8), (0, 0)))          # sublane-pad row count
    return slab


# ---------------------------------------------------------------------------
# Per-call wrapper (graph-dependent glue only; jitted so it fuses with dispatch)
# ---------------------------------------------------------------------------
@functools.partial(jax.jit, static_argnames=("heads", "num_experts"))
def gnn_gate(x, edge_index, param_slab, *, heads, num_experts):
    """GNNGate forward: GATConv(x, edge_index) -> LayerNorm -> mean(-1)."""
    N, _ = x.shape

    # Additive attention mask mask[dst, src]: 0 for edges + self loops (GATConv
    # default add_self_loops=True), -1e30 otherwise. Graph-dependent -> per call.
    src, dst = edge_index[0], edge_index[1]
    mask = jnp.full((N, N), -1e30, jnp.float32)
    mask = mask.at[dst, src].set(0.0)
    idx = jnp.arange(N)
    mask = mask.at[idx, idx].set(0.0)

    kernel = functools.partial(gnn_gate_kernel, heads=heads, num_experts=num_experts)
    vmem = pltpu.MemorySpace.VMEM
    y = pl.pallas_call(
        kernel,
        out_shape=jax.ShapeDtypeStruct((N, 1), jnp.float32),
        in_specs=[pl.BlockSpec(memory_space=vmem)] * 3,
        out_specs=pl.BlockSpec(memory_space=vmem),
    )(x, mask, param_slab)
    return y.reshape(N)


# ---------------------------------------------------------------------------
# Pure-JAX reference (mirrors torch_geometric GATConv + LayerNorm + mean)
# ---------------------------------------------------------------------------
def gnn_gate_ref(x, edge_index, params, *, heads, num_experts):
    N, _ = x.shape
    H, O = heads, num_experts
    F = H * O
    xp = x @ params["w"]                                         # [N, F]
    xph = xp.reshape(N, H, O)
    a_src = (xph * params["att_src"].reshape(1, H, O)).sum(-1)   # [N, H]
    a_dst = (xph * params["att_dst"].reshape(1, H, O)).sum(-1)   # [N, H]

    src, dst = edge_index[0], edge_index[1]
    adj = jnp.zeros((N, N), jnp.float32).at[dst, src].set(1.0)
    adj = adj.at[jnp.arange(N), jnp.arange(N)].set(1.0)

    e = a_dst[:, None, :] + a_src[None, :, :]                    # [N, N, H]
    e = jnp.where(e > 0, e, 0.2 * e)
    e = jnp.where(adj[:, :, None] > 0, e, -jnp.inf)
    attn = jax.nn.softmax(e, axis=1)                             # softmax over source axis
    out = jnp.einsum("ijh,jho->iho", attn, xph).reshape(N, F) + params["bias"]

    mu = out.mean(-1, keepdims=True)
    var = ((out - mu) ** 2).mean(-1, keepdims=True)
    y = (out - mu) / jnp.sqrt(var + 1e-5)
    y = y * params["gamma"] + params["beta"]
    return y.mean(-1)


# ---------------------------------------------------------------------------
if __name__ == "__main__":
    # Small shapes consistent with the module: dim=32 node features,
    # num_experts=4, heads=4 (GAT output / LayerNorm width = 16), N=8 nodes.
    N, D = 8, 32
    num_experts, heads = 4, 4
    F = num_experts * heads

    key = jax.random.PRNGKey(0)
    kx, kw, ks, kd, kg = jax.random.split(key, 5)

    x = jax.random.normal(kx, (N, D), jnp.float32)

    # Ring graph, both directions, no self loops (GATConv adds those itself).
    src = jnp.concatenate([jnp.arange(N), jnp.arange(N)])
    dst = jnp.concatenate([(jnp.arange(N) + 1) % N, (jnp.arange(N) - 1) % N])
    edge_index = jnp.stack([src, dst]).astype(jnp.int32)   # [2, 2N]

    # Deterministic synthetic parameters (GATConv: lin weight, att_src/att_dst,
    # bias; LayerNorm: gamma, beta).
    params = {
        "w": jax.random.normal(kw, (D, F), jnp.float32) * 0.1,
        "att_src": jax.random.normal(ks, (1, F), jnp.float32) * 0.1,
        "att_dst": jax.random.normal(kd, (1, F), jnp.float32) * 0.1,
        "bias": jnp.zeros((1, F), jnp.float32),
        "gamma": 1.0 + 0.05 * jax.random.normal(kg, (1, F), jnp.float32),
        "beta": jnp.full((1, F), 0.01, jnp.float32),
    }

    # Pack constants once; reuse the slab for every subsequent call.
    param_slab = jax.block_until_ready(
        pack_gnn_gate_params(params, heads=heads, num_experts=num_experts))

    out = jax.block_until_ready(
        gnn_gate(x, edge_index, param_slab, heads=heads, num_experts=num_experts))
    ref = jax.block_until_ready(
        gnn_gate_ref(x, edge_index, params, heads=heads, num_experts=num_experts))

    assert out.shape == (N,), out.shape
    assert jnp.allclose(out, ref, atol=1e-3, rtol=1e-3), (out, ref)
    print("KERNEL_OK")
</pallas_src>

<mosaic_0001>
module attributes {stable_mosaic.version = 11 : i64} {
  func.func @gnn_gate_kernel(%arg0: memref<8x32xf32, #tpu.memory_space<vmem>>, %arg1: memref<8x8xf32, #tpu.memory_space<vmem>>, %arg2: memref<56x16xf32, #tpu.memory_space<vmem>>, %arg3: memref<8x1xf32, #tpu.memory_space<vmem>>) attributes {dimension_semantics = [], scalar_prefetch = 0 : i64, scratch_operands = 0 : i64, tpu.core_type = #tpu.core_type<tc>} {
    %c0 = arith.constant 0 : index
    %c0_0 = arith.constant 0 : index
    %0 = vector.load %arg2[%c0, %c0_0] : memref<56x16xf32, #tpu.memory_space<vmem>>, vector<32x16xf32>
    %c32 = arith.constant 32 : index
    %c0_1 = arith.constant 0 : index
    %1 = vector.load %arg2[%c32, %c0_1] : memref<56x16xf32, #tpu.memory_space<vmem>>, vector<16x8xf32>
    %c48 = arith.constant 48 : index
    %c0_2 = arith.constant 0 : index
    %2 = vector.load %arg2[%c48, %c0_2] : memref<56x16xf32, #tpu.memory_space<vmem>>, vector<7x16xf32>
    %3 = vector.extract_strided_slice %2 {offsets = [0, 0], sizes = [1, 16], strides = [1, 1]} : vector<7x16xf32> to vector<1x16xf32>
    %4 = vector.extract_strided_slice %2 {offsets = [1, 0], sizes = [1, 16], strides = [1, 1]} : vector<7x16xf32> to vector<1x16xf32>
    %5 = vector.extract_strided_slice %2 {offsets = [2, 0], sizes = [1, 16], strides = [1, 1]} : vector<7x16xf32> to vector<1x16xf32>
    %c0_3 = arith.constant 0 : index
    %c0_4 = arith.constant 0 : index
    %6 = vector.load %arg0[%c0_3, %c0_4] : memref<8x32xf32, #tpu.memory_space<vmem>>, vector<8x32xf32>
    %cst = arith.constant dense<0.000000e+00> : vector<8x16xf32>
    %7 = tpu.matmul %6, %0, %cst {dimension_numbers = #tpu.dot_dimension_numbers<[1], [0], [0], [1], [0, 0, 1, 1], [], []>} : vector<8x32xf32>, vector<32x16xf32>, vector<8x16xf32> -> vector<8x16xf32>
    %cst_5 = arith.constant dense<0.000000e+00> : vector<8x8xf32>
    %8 = tpu.matmul %7, %1, %cst_5 {dimension_numbers = #tpu.dot_dimension_numbers<[1], [0], [0], [1], [0, 0, 1, 1], [], []>} : vector<8x16xf32>, vector<16x8xf32>, vector<8x8xf32> -> vector<8x8xf32>
    %9 = vector.extract_strided_slice %8 {offsets = [0, 0], sizes = [8, 4], strides = [1, 1]} : vector<8x8xf32> to vector<8x4xf32>
    %10 = tpu.transpose %9, [1, 0] : vector<8x4xf32> -> vector<4x8xf32>
    %c0_6 = arith.constant 0 : index
    %c0_7 = arith.constant 0 : index
    %11 = vector.load %arg1[%c0_6, %c0_7] : memref<8x8xf32, #tpu.memory_space<vmem>>, vector<8x8xf32>
    %12 = vector.extract_strided_slice %8 {offsets = [0, 4], sizes = [8, 1], strides = [1, 1]} : vector<8x8xf32> to vector<8x1xf32>
    %13 = vector.extract_strided_slice %10 {offsets = [0, 0], sizes = [1, 8], strides = [1, 1]} : vector<4x8xf32> to vector<1x8xf32>
    %14 = vector.broadcast %12 : vector<8x1xf32> to vector<8x8xf32>
    %15 = vector.broadcast %13 : vector<1x8xf32> to vector<8x8xf32>
    %16 = arith.addf %14, %15 : vector<8x8xf32>
    %cst_8 = arith.constant 0.000000e+00 : f32
    %17 = vector.broadcast %cst_8 : f32 to vector<8x8xf32>
    %18 = arith.cmpf ogt, %16, %17 : vector<8x8xf32>
    %cst_9 = arith.constant 2.000000e-01 : f32
    %19 = vector.broadcast %cst_9 : f32 to vector<8x8xf32>
    %20 = arith.mulf %19, %16 : vector<8x8xf32>
    %21 = arith.select %18, %16, %20 : vector<8x8xi1>, vector<8x8xf32>
    %22 = arith.addf %21, %11 : vector<8x8xf32>
    %23 = vector.extract_strided_slice %8 {offsets = [0, 5], sizes = [8, 1], strides = [1, 1]} : vector<8x8xf32> to vector<8x1xf32>
    %24 = vector.extract_strided_slice %10 {offsets = [1, 0], sizes = [1, 8], strides = [1, 1]} : vector<4x8xf32> to vector<1x8xf32>
    %25 = vector.broadcast %23 : vector<8x1xf32> to vector<8x8xf32>
    %26 = vector.broadcast %24 : vector<1x8xf32> to vector<8x8xf32>
    %27 = arith.addf %25, %26 : vector<8x8xf32>
    %cst_10 = arith.constant 0.000000e+00 : f32
    %28 = vector.broadcast %cst_10 : f32 to vector<8x8xf32>
    %29 = arith.cmpf ogt, %27, %28 : vector<8x8xf32>
    %cst_11 = arith.constant 2.000000e-01 : f32
    %30 = vector.broadcast %cst_11 : f32 to vector<8x8xf32>
    %31 = arith.mulf %30, %27 : vector<8x8xf32>
    %32 = arith.select %29, %27, %31 : vector<8x8xi1>, vector<8x8xf32>
    %33 = arith.addf %32, %11 : vector<8x8xf32>
    %34 = vector.extract_strided_slice %8 {offsets = [0, 6], sizes = [8, 1], strides = [1, 1]} : vector<8x8xf32> to vector<8x1xf32>
    %35 = vector.extract_strided_slice %10 {offsets = [2, 0], sizes = [1, 8], strides = [1, 1]} : vector<4x8xf32> to vector<1x8xf32>
    %36 = vector.broadcast %34 : vector<8x1xf32> to vector<8x8xf32>
    %37 = vector.broadcast %35 : vector<1x8xf32> to vector<8x8xf32>
    %38 = arith.addf %36, %37 : vector<8x8xf32>
    %cst_12 = arith.constant 0.000000e+00 : f32
    %39 = vector.broadcast %cst_12 : f32 to vector<8x8xf32>
    %40 = arith.cmpf ogt, %38, %39 : vector<8x8xf32>
    %cst_13 = arith.constant 2.000000e-01 : f32
    %41 = vector.broadcast %cst_13 : f32 to vector<8x8xf32>
    %42 = arith.mulf %41, %38 : vector<8x8xf32>
    %43 = arith.select %40, %38, %42 : vector<8x8xi1>, vector<8x8xf32>
    %44 = arith.addf %43, %11 : vector<8x8xf32>
    %45 = vector.extract_strided_slice %8 {offsets = [0, 7], sizes = [8, 1], strides = [1, 1]} : vector<8x8xf32> to vector<8x1xf32>
    %46 = vector.extract_strided_slice %10 {offsets = [3, 0], sizes = [1, 8], strides = [1, 1]} : vector<4x8xf32> to vector<1x8xf32>
    %47 = vector.broadcast %45 : vector<8x1xf32> to vector<8x8xf32>
    %48 = vector.broadcast %46 : vector<1x8xf32> to vector<8x8xf32>
    %49 = arith.addf %47, %48 : vector<8x8xf32>
    %cst_14 = arith.constant 0.000000e+00 : f32
    %50 = vector.broadcast %cst_14 : f32 to vector<8x8xf32>
    %51 = arith.cmpf ogt, %49, %50 : vector<8x8xf32>
    %cst_15 = arith.constant 2.000000e-01 : f32
    %52 = vector.broadcast %cst_15 : f32 to vector<8x8xf32>
    %53 = arith.mulf %52, %49 : vector<8x8xf32>
    %54 = arith.select %51, %49, %53 : vector<8x8xi1>, vector<8x8xf32>
    %55 = arith.addf %54, %11 : vector<8x8xf32>
    %56 = tpu.concatenate %22, %33, %44, %55 in 0 : vector<8x8xf32>, vector<8x8xf32>, vector<8x8xf32>, vector<8x8xf32> -> vector<32x8xf32>
    %cst_16 = arith.constant dense<0xFF800000> : vector<32xf32>
    %57 = vector.multi_reduction <maximumf>, %56, %cst_16 [1] : vector<32x8xf32> to vector<32xf32>
    %58 = vector.shape_cast %57 : vector<32xf32> to vector<32x1xf32>
    %59 = vector.broadcast %58 : vector<32x1xf32> to vector<32x8xf32>
    %60 = arith.subf %56, %59 : vector<32x8xf32>
    %61 = math.exp %60 : vector<32x8xf32>
    %cst_17 = arith.constant dense<0.000000e+00> : vector<32xf32>
    %62 = vector.multi_reduction <add>, %61, %cst_17 [1] : vector<32x8xf32> to vector<32xf32>
    %63 = vector.shape_cast %62 : vector<32xf32> to vector<32x1xf32>
    %cst_18 = arith.constant 1.000000e-30 : f32
    %64 = vector.broadcast %cst_18 : f32 to vector<32x1xf32>
    %65 = arith.maximumf %63, %64 : vector<32x1xf32>
    %66 = tpu.reciprocal %65 {approx = true} : vector<32x1xf32> -> vector<32x1xf32>
    %67 = arith.mulf %65, %66 : vector<32x1xf32>
    %cst_19 = arith.constant 2.000000e+00 : f32
    %68 = vector.broadcast %cst_19 : f32 to vector<32x1xf32>
    %69 = arith.subf %68, %67 : vector<32x1xf32>
    %70 = arith.mulf %66, %69 : vector<32x1xf32>
    %71 = vector.broadcast %70 : vector<32x1xf32> to vector<32x8xf32>
    %72 = arith.mulf %61, %71 : vector<32x8xf32>
    %cst_20 = arith.constant dense<0.000000e+00> : vector<32x16xf32>
    %73 = tpu.matmul %72, %7, %cst_20 {dimension_numbers = #tpu.dot_dimension_numbers<[1], [0], [0], [1], [0, 0, 1, 1], [], []>} : vector<32x8xf32>, vector<8x16xf32>, vector<32x16xf32> -> vector<32x16xf32>
    %74 = vector.extract_strided_slice %73 {offsets = [0, 0], sizes = [8, 16], strides = [1, 1]} : vector<32x16xf32> to vector<8x16xf32>
    %75 = vector.extract_strided_slice %2 {offsets = [3, 0], sizes = [1, 16], strides = [1, 1]} : vector<7x16xf32> to vector<1x16xf32>
    %76 = vector.broadcast %75 : vector<1x16xf32> to vector<8x16xf32>
    %77 = arith.mulf %74, %76 : vector<8x16xf32>
    %78 = vector.broadcast %3 : vector<1x16xf32> to vector<8x16xf32>
    %79 = arith.addf %78, %77 : vector<8x16xf32>
    %80 = vector.extract_strided_slice %73 {offsets = [8, 0], sizes = [8, 16], strides = [1, 1]} : vector<32x16xf32> to vector<8x16xf32>
    %81 = vector.extract_strided_slice %2 {offsets = [4, 0], sizes = [1, 16], strides = [1, 1]} : vector<7x16xf32> to vector<1x16xf32>
    %82 = vector.broadcast %81 : vector<1x16xf32> to vector<8x16xf32>
    %83 = arith.mulf %80, %82 : vector<8x16xf32>
    %84 = arith.addf %79, %83 : vector<8x16xf32>
    %85 = vector.extract_strided_slice %73 {offsets = [16, 0], sizes = [8, 16], strides = [1, 1]} : vector<32x16xf32> to vector<8x16xf32>
    %86 = vector.extract_strided_slice %2 {offsets = [5, 0], sizes = [1, 16], strides = [1, 1]} : vector<7x16xf32> to vector<1x16xf32>
    %87 = vector.broadcast %86 : vector<1x16xf32> to vector<8x16xf32>
    %88 = arith.mulf %85, %87 : vector<8x16xf32>
    %89 = arith.addf %84, %88 : vector<8x16xf32>
    %90 = vector.extract_strided_slice %73 {offsets = [24, 0], sizes = [8, 16], strides = [1, 1]} : vector<32x16xf32> to vector<8x16xf32>
    %91 = vector.extract_strided_slice %2 {offsets = [6, 0], sizes = [1, 16], strides = [1, 1]} : vector<7x16xf32> to vector<1x16xf32>
    %92 = vector.broadcast %91 : vector<1x16xf32> to vector<8x16xf32>
    %93 = arith.mulf %90, %92 : vector<8x16xf32>
    %94 = arith.addf %89, %93 : vector<8x16xf32>
    %cst_21 = arith.constant dense<0.000000e+00> : vector<8xf32>
    %95 = vector.multi_reduction <add>, %94, %cst_21 [1] : vector<8x16xf32> to vector<8xf32>
    %96 = vector.shape_cast %95 : vector<8xf32> to vector<8x1xf32>
    %cst_22 = arith.constant 1.600000e+01 : f32
    %97 = vector.broadcast %cst_22 : f32 to vector<8x1xf32>
    %98 = arith.divf %96, %97 : vector<8x1xf32>
    %99 = vector.broadcast %98 : vector<8x1xf32> to vector<8x16xf32>
    %100 = arith.subf %94, %99 : vector<8x16xf32>
    %101 = arith.mulf %100, %100 : vector<8x16xf32>
    %cst_23 = arith.constant dense<0.000000e+00> : vector<8xf32>
    %102 = vector.multi_reduction <add>, %101, %cst_23 [1] : vector<8x16xf32> to vector<8xf32>
    %103 = vector.shape_cast %102 : vector<8xf32> to vector<8x1xf32>
    %cst_24 = arith.constant 1.600000e+01 : f32
    %104 = vector.broadcast %cst_24 : f32 to vector<8x1xf32>
    %105 = arith.divf %103, %104 : vector<8x1xf32>
    %106 = vector.broadcast %98 : vector<8x1xf32> to vector<8x16xf32>
    %107 = arith.subf %94, %106 : vector<8x16xf32>
    %cst_25 = arith.constant 9.99999974E-6 : f32
    %108 = vector.broadcast %cst_25 : f32 to vector<8x1xf32>
    %109 = arith.addf %105, %108 : vector<8x1xf32>
    %110 = math.rsqrt %109 : vector<8x1xf32>
    %111 = vector.broadcast %110 : vector<8x1xf32> to vector<8x16xf32>
    %112 = arith.mulf %107, %111 : vector<8x16xf32>
    %113 = vector.broadcast %4 : vector<1x16xf32> to vector<8x16xf32>
    %114 = arith.mulf %112, %113 : vector<8x16xf32>
    %115 = vector.broadcast %5 : vector<1x16xf32> to vector<8x16xf32>
    %116 = arith.addf %114, %115 : vector<8x16xf32>
    %cst_26 = arith.constant dense<0.000000e+00> : vector<8xf32>
    %117 = vector.multi_reduction <add>, %116, %cst_26 [1] : vector<8x16xf32> to vector<8xf32>
    %118 = vector.shape_cast %117 : vector<8xf32> to vector<8x1xf32>
    %cst_27 = arith.constant 1.600000e+01 : f32
    %119 = vector.broadcast %cst_27 : f32 to vector<8x1xf32>
    %120 = arith.divf %118, %119 : vector<8x1xf32>
    %c0_28 = arith.constant 0 : index
    %c0_29 = arith.constant 0 : index
    %121 = vector.load %arg3[%c0_28, %c0_29] : memref<8x1xf32, #tpu.memory_space<vmem>>, vector<8x1xf32>
    tpu.vector_store %arg3[%c0_28, %c0_29], %120 {strides = array<i32>} : memref<8x1xf32, #tpu.memory_space<vmem>>, vector<8x1xf32>,
    return
  }
}

</mosaic_0001>

<bundles_post_ra>
// kernel: gnn_gate.1
= control target key start
LH: loop header
LB: loop body
LE: loop exit
PB: predicated region body
PF: predicated region fallthrough
CT: control target
= control target key end

     0   :  { %vm22_vm0 = vcmask 261120   ;;  %v340_v7 = vmov 5   ;;  %v341_v8 = vmov 4   ;;  %vm46_vm1 = vcmask 130048   ;;  %s411_s2 = inlined_call_operand.vmem [shape: f32[56,16], index: 2, kind: input, shape index: {}]   ;;  %s412_s0 = inlined_call_operand.vmem [shape: f32[8,32], index: 0, kind: input, shape index: {}]   ;;  %s413_s1 = inlined_call_operand.vmem [shape: f32[8,8], index: 1, kind: input, shape index: {}]   ;;  %s414_s3 = inlined_call_operand.vmem [shape: f32[8,1], index: 3, kind: output, shape index: {}]  }
   0x1   :  { %v17_v0 = vld [vmem:[%s411_s2 + $0x18] sm:$0xff]  ;;  %v16_v1 = vld [vmem:[%s411_s2 + $0x10] sm:$0xff]  ;;  %v19_v2 = vld [vmem:[%s411_s2 + $0x28] sm:$0xff]  ;;  %317 = vset.pattern.permute.xlu1 %v340_v7  ;;  %315 = vset.pattern.permute.xlu0 %v341_v8  ;;  %v342_v11 = vmov 7   ;;  %v343_v12 = vmov 6   ;;  %vm144_vm5 = vcmask 64512  }
   0x2   :  { %38 = vmatpush.msra.mxu0 %v17_v0  ;;  %v15_v3 = vld [vmem:[%s411_s2 + $0x8] sm:$0xff]  ;;  %64 = vmatpush.msra.mxu1 %v19_v2  ;;  %v14_v4 = vld [vmem:[%s411_s2] sm:$0xff]  ;;  %vm296_vm11 = vcmask 7168  }
   0x3   :  { %v21_v5 = vld [vmem:[%s412_s0] sm:$0xff] }
   0x4   :  { %39 = vmatpush.msra.mxu0 %v16_v1  ;;  %v18_v6 = vld [vmem:[%s411_s2 + $0x20] sm:$0xff] }
   0x5   :  { %65 = vmatpush.msra.mxu1 %v18_v6  ;;  %v102_v26 = vld [vmem:[%s413_s1] sm:$0xff] }
   0x6   :  { %40 = vmatpush.msra.mxu0 %v15_v3 }
   0x8   :  { %41 = vmatpush.msra.mxu0 %v14_v4 }
   0x9   :  { %302 = vmatmul.msk.f32.vlgmr.msra.gmra.mxu0 %vm22_vm0, %v21_v5 }
  0x86   :  { %v43_v9 = vpop.f32.mrf.mxu0 }
  0x87   :  { %303 = vmatmul.msk.f32.vlgmr.msra.gmra.mxu1 %vm46_vm1, %v43_v9  ;;  %232 = vmatpush.msra.mxu2 %v43_v9 }
  0x88   :  { %308 = vmatpush.msra.mxu3 %v43_v9 }
 0x104   :  { %v67_v10 = vpop.f32.mrf.mxu1 }
 0x105   :  { %70 = vxpose.xlu2.b32.start.end [1/1] (short) (narrow) %v67_v10, 8  ;;  %115 = vperm.xlu1 %317, %v67_v10  }
 0x106   :  { %105 = vperm.xlu0 %315, %v67_v10  }
 0x10d   :  { %318 = vset.pattern.permute.xlu1 %v342_v11 }
 0x10e   :  { %316 = vset.pattern.permute.xlu0 %v343_v12  ;;  %135 = vperm.xlu1 %318, %v67_v10  }
 0x10f   :  { %125 = vperm.xlu0 %316, %v67_v10  }
 0x117   :  { %319 = vset.pattern.permute.xlu0 %v342_v11 }
 0x177   :  { %v116_v14 = vpop.permute.xlu1 %115 }
 0x178   :  { %v106_v13 = vpop.permute.xlu0 %105 }
 0x180   :  { %v136_v21 = vpop.permute.xlu1 %135 }
 0x181   :  { %v126_v20 = vpop.permute.xlu0 %125 }
 0x19e   :  { %v86_v15 = vpop.trf.xlu2 }
 0x19f   :  { %v108_v16 = vperm.slane %v86_v15, 0  ;;  %v118_v17 = vperm.slane %v86_v15, 1  ;;  %v128_v18 = vperm.slane %v86_v15, 2  ;;  %v138_v19 = vperm.slane %v86_v15, 3 }
 0x1a1   :  { %v109_v22 = vadd.f32 %v108_v16, %v106_v13  ;;  %v119_v23 = vadd.f32 %v118_v17, %v116_v14  ;;  %v129_v24 = vadd.f32 %v128_v18, %v126_v20  ;;  %v139_v25 = vadd.f32 %v138_v19, %v136_v21 }
 0x1a3   :  { %vm120_vm2 = vcmp.gt.f32.partialorder %v119_v23, 0.0  ;;  %v121_v27 = vmul.f32 0.2, %v119_v23  ;;  %vm110_vm3 = vcmp.gt.f32.partialorder %v109_v22, 0.0  ;;  %v111_v28 = vmul.f32 0.2, %v109_v22 }
 0x1a4   :  { %vm130_vm4 = vcmp.gt.f32.partialorder %v129_v24, 0.0  ;;  %v131_v29 = vmul.f32 0.2, %v129_v24  ;;  %v141_v35 = vmul.f32 0.2, %v139_v25  ;;  %vm140_vm6 = vcmp.gt.f32.partialorder %v139_v25, 0.0 }
 0x1a5   :  { %v122_v30 = vsel %vm120_vm2, %v119_v23, %v121_v27  ;;  %v112_v31 = vsel %vm110_vm3, %v109_v22, %v111_v28  ;;  %v20_v27 = vld [vmem:[%s411_s2 + $0x30] sm:$0x7f] }
 0x1a6   :  { %v123_v32 = vadd.f32 %v122_v30, %v102_v26  ;;  %v113_v33 = vadd.f32 %v112_v31, %v102_v26  ;;  %v132_v34 = vsel %vm130_vm4, %v129_v24, %v131_v29  ;;  %v142_v40 = vsel %vm140_vm6, %v139_v25, %v141_v35 }
 0x1a7   :  { %v133_v36 = vadd.f32 %v132_v34, %v102_v26  ;;  %v143_v41 = vadd.f32 %v142_v40, %v102_v26  ;;  %v246_v29 = vperm.slane %v20_v27, 3  ;;  %v253_v34 = vperm.slane %v20_v27, 5 }
 0x1a8   :  { %v148_v37 = vsel %vm144_vm5, %v123_v32, -inf  ;;  %v145_v38 = vsel %vm144_vm5, %v113_v33, -inf }
 0x1a9   :  { %149 = vmax.xlane.f32.xlu0 %v148_v37  ;;  %146 = vmax.xlane.f32.xlu2 %v145_v38  ;;  %v151_v39 = vsel %vm144_vm5, %v133_v36, -inf  ;;  %v154_v42 = vsel %vm144_vm5, %v143_v41, -inf  ;;  %v256_v38 = vperm.slane %v20_v27, 6 }
 0x1aa   :  { %152 = vmax.xlane.f32.xlu1 %v151_v39 }
 0x1b2   :  { %155 = vmax.xlane.f32.xlu1 %v154_v42 }
 0x21c   :  { %v147_v43 = vpop.xlane.xlu2 %146  ;;  %v150_v44 = vpop.xlane.xlu0 %149 }
 0x21d   :  { %v157_v45 = vsub.f32 %v113_v33, %v147_v43  ;;  %v153_v46 = vpop.xlane.xlu1 %152  ;;  %v158_v49 = vsub.f32 %v123_v32, %v150_v44  ;;  %v248_v32 = vperm.slane %v20_v27, 0  ;;  %v250_v33 = vperm.slane %v20_v27, 4 }
 0x21e   :  { %v159_v47 = vsub.f32 %v133_v36, %v153_v46  ;;  %v344_v46 = vmov 16.0  }
 0x21f   :  { %v161_v48 = vmul.f32 1.442695, %v157_v45  ;;  %v163_v51 = vmul.f32 1.442695, %v158_v49 }
 0x220   :  { %v165_v50 = vmul.f32 1.442695, %v159_v47 }
 0x221   :  { %320 = vpow2.f32 %v161_v48 }
 0x222   :  { %322 = vpow2.f32 %v165_v50 }
 0x223   :  { %324 = vpow2.f32 %v163_v51 }
 0x225   :  { %v156_v52 = vpop.xlane.xlu1 %155 }
 0x226   :  { %v160_v53 = vsub.f32 %v143_v41, %v156_v52 }
 0x227   :  { %v321_v54 = vpop.eup %320 }
 0x228   :  { %v323_v55 = vpop.eup %322  ;;  %v167_v56 = vmul.f32 1.442695, %v160_v53  ;;  %v169_v57 = vsel %vm144_vm5, %v321_v54, 0.0 }
 0x229   :  { %170 = vadd.xlane.f32.xlu0 %v169_v57  ;;  %v175_v58 = vsel %vm144_vm5, %v323_v55, 0.0  ;;  %v325_v59 = vpop.eup %324 }
 0x22a   :  { %326 = vpow2.f32 %v167_v56  ;;  %176 = vadd.xlane.f32.xlu1 %v175_v58  ;;  %v172_v61 = vsel %vm144_vm5, %v325_v59, 0.0 }
 0x230   :  { %v327_v60 = vpop.eup %326 }
 0x231   :  { %v178_v62 = vsel %vm144_vm5, %v327_v60, 0.0  ;;  %173 = vadd.xlane.f32.xlu0 %v172_v61 }
 0x232   :  { %179 = vadd.xlane.f32.xlu1 %v178_v62 }
 0x29c   :  { %v171_v63 = vpop.xlane.xlu0 %170 }
 0x29d   :  { %v177_v0 = vpop.xlane.xlu1 %176  ;;  %v181_v1 = vmax.f32 %v171_v63, 1e-30 }
 0x29e   :  { %v183_v2 = vmax.f32 %v177_v0, 1e-30 }
 0x29f   :  { %328 = vrcp.f32 %v181_v1 }
 0x2a0   :  { %330 = vrcp.f32 %v183_v2 }
 0x2a4   :  { %v174_v3 = vpop.xlane.xlu0 %173 }
 0x2a5   :  { %v329_v4 = vpop.eup %328  ;;  %v180_v5 = vpop.xlane.xlu1 %179  ;;  %v182_v6 = vmax.f32 %v174_v3, 1e-30  ;;  %v288_v3 = vperm.slane %v20_v27, 1 }
 0x2a6   :  { %v331_v7 = vpop.eup %330  ;;  %v189_v8 = vmul.f32 %v329_v4, %v181_v1  ;;  %v184_v9 = vmax.f32 %v180_v5, 1e-30 }
 0x2a7   :  { %v191_v10 = vmul.f32 %v331_v7, %v183_v2  ;;  %332 = vrcp.f32 %v182_v6 }
 0x2a8   :  { %v193_v11 = vsub.f32 2.0, %v189_v8  ;;  %334 = vrcp.f32 %v184_v9 }
 0x2a9   :  { %v195_v12 = vsub.f32 2.0, %v191_v10  ;;  %336 = vrcp.f32 %v344_v46 }
 0x2aa   :  { %v197_v13 = vmul.f32 %v329_v4, %v193_v11 }
 0x2ab   :  { %v199_v14 = vmul.f32 %v331_v7, %v195_v12 }
 0x2ac   :  { %v201_v15 = vmul.f32 %v321_v54, %v197_v13 }
 0x2ad   :  { %v333_v16 = vpop.eup %332  ;;  %v203_v17 = vmul.f32 %v323_v55, %v199_v14 }
 0x2ae   :  { %v335_v18 = vpop.eup %334  ;;  %v190_v19 = vmul.f32 %v333_v16, %v182_v6  ;;  %304 = vmatmul.msk.f32.vlgmr.msra.gmra.mxu2 %vm144_vm5, %v201_v15  ;;  %v290_v6 = vperm.slane %v20_v27, 2 }
 0x2af   :  { %v192_v20 = vmul.f32 %v335_v18, %v184_v9  ;;  %306 = vmatmul.msk.f32.vlgmr.msra.gmra.mxu3 %vm144_vm5, %v203_v17  ;;  %v337_v47 = vpop.eup %336 }
 0x2b0   :  { %v194_v21 = vsub.f32 2.0, %v190_v19  ;;  %v263_v48 = vmul.f32 16.0, %v337_v47  ;;  %vm267_vm7 = vweird.f32 %v337_v47 }
 0x2b1   :  { %v196_v22 = vsub.f32 2.0, %v192_v20 }
 0x2b2   :  { %v198_v23 = vmul.f32 %v333_v16, %v194_v21  ;;  %v264_v49 = vsub.f32 1.0, %v263_v48 }
 0x2b3   :  { %v200_v24 = vmul.f32 %v335_v18, %v196_v22 }
 0x2b4   :  { %v202_v25 = vmul.f32 %v325_v59, %v198_v23  ;;  %v265_v50 = vmul.f32 %v337_v47, %v264_v49 }
 0x2b5   :  { %v204_v26 = vmul.f32 %v327_v60, %v200_v24 }
 0x2b6   :  { %305 = vmatmul.msk.f32.gmra.mxu2 %vm144_vm5, %v202_v25  ;;  %v266_v51 = vadd.f32 %v337_v47, %v265_v50 }
 0x2b7   :  { %307 = vmatmul.msk.f32.gmra.mxu3 %vm144_vm5, %v204_v26 }
 0x2b8   :  { %v268_v52 = vsel %vm267_vm7, %v337_v47, %v266_v51 }
 0x331   :  { %v234_v28 = vpop.f32.mrf.mxu2 }
 0x332   :  { %v240_v30 = vpop.f32.mrf.mxu3  ;;  %v247_v31 = vmul.f32 %v246_v29, %v234_v28 }
 0x333   :  { %v254_v40 = vmul.f32 %v253_v34, %v240_v30 }
 0x334   :  { %v249_v36 = vadd.f32 %v248_v32, %v247_v31 }
 0x339   :  { %v237_v35 = vpop.f32.mrf.mxu2 }
 0x33a   :  { %v251_v37 = vmul.f32 %v250_v33, %v237_v35  ;;  %v243_v39 = vpop.f32.mrf.mxu3 }
 0x33b   :  { %v257_v42 = vmul.f32 %v256_v38, %v243_v39 }
 0x33c   :  { %v252_v41 = vadd.f32 %v251_v37, %v249_v36 }
 0x33e   :  { %v255_v43 = vadd.f32 %v254_v40, %v252_v41 }
 0x340   :  { %v258_v44 = vadd.f32 %v257_v42, %v255_v43 }
 0x342   :  { %v259_v45 = vsel %vm46_vm1, %v258_v44, 0.0 }
 0x343   :  { %260 = vadd.xlane.f32.xlu0 %v259_v45 }
 0x3b6   :  { %v261_v53 = vpop.xlane.xlu0 %260 }
 0x3b7   :  { %v269_v54 = vmul.f32 %v268_v52, %v261_v53 }
 0x3b9   :  { %v270_v55 = vsub.f32 %v258_v44, %v269_v54 }
 0x3bb   :  { %v271_v56 = vmul.f32 %v270_v55, %v270_v55 }
 0x3bd   :  { %v272_v57 = vsel %vm46_vm1, %v271_v56, 0.0 }
 0x3be   :  { %273 = vadd.xlane.f32.xlu1 %v272_v57 }
 0x431   :  { %v274_v58 = vpop.xlane.xlu1 %273 }
 0x432   :  { %v275_v59 = vmul.f32 %v274_v58, %v268_v52 }
 0x434   :  { %v276_v60 = vadd.f32 1e-05, %v275_v59 }
 0x436   :  { %338 = vrsqrt.f32 %v276_v60  ;;  %vm283_vm9 = vweird.f32 %v276_v60 }
 0x43c   :  { %v339_v61 = vpop.eup %338 }
 0x43d   :  { %v278_v62 = vmul.f32 %v339_v61, %v276_v60  ;;  %vm284_vm8 = vweird.f32 %v339_v61 }
 0x43e   :  { %vm285_vm10 = vmor %vm283_vm9, %vm284_vm8 }
 0x43f   :  { %v279_v63 = vmul.f32 %v339_v61, %v278_v62 }
 0x441   :  { %v280_v0 = vmul.f32 0.5, %v279_v63 }
 0x443   :  { %v281_v1 = vsub.f32 1.5, %v280_v0 }
 0x445   :  { %v282_v2 = vmul.f32 %v339_v61, %v281_v1 }
 0x447   :  { %v286_v4 = vsel %vm285_vm10, %v339_v61, %v282_v2 }
 0x448   :  { %v287_v5 = vmul.f32 %v286_v4, %v270_v55 }
 0x44a   :  { %v289_v7 = vmul.f32 %v288_v3, %v287_v5 }
 0x44c   :  { %v291_v8 = vadd.f32 %v290_v6, %v289_v7 }
 0x44e   :  { %v292_v9 = vsel %vm46_vm1, %v291_v8, 0.0 }
 0x44f   :  { %293 = vadd.xlane.f32.xlu0 %v292_v9 }
 0x4c2   :  { %v294_v10 = vpop.xlane.xlu0 %293 }
 0x4c3   :  { %v295_v11 = vmul.f32 %v294_v10, %v268_v52 }
 0x4c5   :  { %297 = vst.msk [vmem:[%s414_s3] sm:$0xff] %vm296_vm11, %v295_v11 }

</bundles_post_ra>
